<compile_context>
chip_gen: v6e
topology: v6e:2x2x1
jax: 0.10.0
libtpu: 0.0.40
codegen_flags: <defaults>
</compile_context>

<pallas_src>
import math
import functools

import jax
import jax.numpy as jnp
from jax.experimental import pallas as pl
from jax.experimental.pallas import tpu as pltpu


def _mha_kernel(q_ref, kv_ref,
                wq_ref, bq_ref, wk_ref, bk_ref, wv_ref, bv_ref,
                wo_ref, bo_ref, gamma_ref, beta_ref,
                o_ref,
                *, n_heads, d_head, scale, eps):
    # q_ref: (1, Sq, D)   kv_ref: (1, Skv, D)
    q_f32 = q_ref[0].astype(jnp.float32)           # residual path stays f32
    q_bf = q_ref[0].astype(jnp.bfloat16)           # MXU operands in bf16
    kv_bf = kv_ref[0].astype(jnp.bfloat16)

    Sq = q_f32.shape[0]
    Skv = kv_bf.shape[0]

    # ---- Q/K/V projections: single wide MXU matmuls, f32 accumulation ----
    pq = jnp.dot(q_bf, wq_ref[...], preferred_element_type=jnp.float32) + bq_ref[...]   # (Sq, H*dh)
    pk = jnp.dot(kv_bf, wk_ref[...], preferred_element_type=jnp.float32) + bk_ref[...]  # (Skv, H*dh)
    pv = jnp.dot(kv_bf, wv_ref[...], preferred_element_type=jnp.float32) + bv_ref[...]  # (Skv, H*dh)

    # ---- head-batched attention: one relayout each, then batched MXU contractions ----
    qh = jnp.transpose(pq.reshape(Sq, n_heads, d_head), (1, 0, 2)).astype(jnp.bfloat16)   # (H, Sq, dh)
    kh = jnp.transpose(pk.reshape(Skv, n_heads, d_head), (1, 0, 2)).astype(jnp.bfloat16)  # (H, Skv, dh)
    vh = jnp.transpose(pv.reshape(Skv, n_heads, d_head), (1, 0, 2)).astype(jnp.bfloat16)  # (H, Skv, dh)

    s = jnp.einsum('hqd,hkd->hqk', qh, kh, preferred_element_type=jnp.float32)  # (H, Sq, Skv)
    if scale:
        s = s * (1.0 / math.sqrt(d_head))

    # softmax over Skv — elementwise math in f32, reciprocal on the EUP slot
    s_max = jnp.max(s, axis=-1, keepdims=True)
    p = jnp.exp(s - s_max)
    p = p * pl.reciprocal(jnp.sum(p, axis=-1, keepdims=True), approx=True)

    attn = jnp.einsum('hqk,hkd->hqd', p.astype(jnp.bfloat16), vh,
                      preferred_element_type=jnp.float32)                       # (H, Sq, dh)

    # ---- output projection folded over heads (no concat): sum_h attn[h] @ Wo[h] ----
    out_h = jnp.einsum('hqd,hdo->hqo', attn.astype(jnp.bfloat16), wo_ref[...],
                       preferred_element_type=jnp.float32)                      # (H, Sq, D)
    out = jnp.sum(out_h, axis=0) + bo_ref[...]                                  # (Sq, D)

    # ---- residual + LayerNorm (f32) ----
    res = q_f32 + out
    mean = jnp.mean(res, axis=-1, keepdims=True)
    cent = res - mean
    var = jnp.mean(cent * cent, axis=-1, keepdims=True)
    y = cent * jax.lax.rsqrt(var + eps) * gamma_ref[...] + beta_ref[...]

    o_ref[0] = y.astype(o_ref.dtype)


def multi_head_attention(q, kv, params, *, n_heads, d_head, scale=True, eps=1e-5):
    """Pallas MultiHeadAttention forward (mask=None, dropout p=0)."""
    bs, S, D = q.shape
    Skv = kv.shape[1]
    HD = n_heads * d_head

    wq, bq, wk, bk, wv, bv, wo, bo, gamma, beta = params

    # bf16 MXU operands (accumulation in f32 inside the kernel); biases / LN stay f32.
    wq_b = wq.astype(jnp.bfloat16)
    wk_b = wk.astype(jnp.bfloat16)
    wv_b = wv.astype(jnp.bfloat16)
    # Reshape output weight (HD, D) -> (H, dh, D) so the kernel can contract per head
    # without a lane-axis concatenate.
    wo_b = wo.reshape(n_heads, d_head, D).astype(jnp.bfloat16)

    # Query-block grid axis: keeps tiles VMEM-friendly at large S and exposes >=2
    # parallel grid steps for megacore even when bs == 1.
    blk_q = 128 if (S % 128 == 0) else S
    n_qblk = S // blk_q

    kernel = functools.partial(_mha_kernel, n_heads=n_heads, d_head=d_head,
                               scale=scale, eps=eps)

    def rep2d(shape):
        return pl.BlockSpec(shape, lambda b, i: (0, 0))

    return pl.pallas_call(
        kernel,
        out_shape=jax.ShapeDtypeStruct((bs, S, D), q.dtype),
        grid_spec=pltpu.PrefetchScalarGridSpec(
            num_scalar_prefetch=0,
            grid=(bs, n_qblk),
            in_specs=[
                pl.BlockSpec((1, blk_q, D), lambda b, i: (b, i, 0)),   # q block
                pl.BlockSpec((1, Skv, D), lambda b, i: (b, 0, 0)),     # full kv
                rep2d((D, HD)), rep2d((1, HD)),                        # q_wgt, q_bias
                rep2d((D, HD)), rep2d((1, HD)),                        # k_wgt, k_bias
                rep2d((D, HD)), rep2d((1, HD)),                        # v_wgt, v_bias
                pl.BlockSpec((n_heads, d_head, D),
                             lambda b, i: (0, 0, 0)),                  # out_wgt (H, dh, D)
                rep2d((1, D)),                                         # out_bias
                rep2d((1, D)), rep2d((1, D)),                          # ln gamma, beta
            ],
            out_specs=pl.BlockSpec((1, blk_q, D), lambda b, i: (b, i, 0)),
        ),
        compiler_params=pltpu.CompilerParams(
            dimension_semantics=("parallel", "parallel")),
    )(q, kv, wq_b, bq, wk_b, bk, wv_b, bv, wo_b, bo, gamma, beta)


def _reference(q, kv, params, *, n_heads, d_head, scale=True, eps=1e-5):
    """Pure-JAX f32 reference mirroring the PyTorch forward (mask=None, p=0)."""
    wq, bq, wk, bk, wv, bv, wo, bo, gamma, beta = params
    bs, S, D = q.shape

    def proj(x, w, b):
        y = x @ w + b                                  # (bs, seq, H*dh)
        y = y.reshape(bs, x.shape[1], n_heads, d_head)
        return jnp.transpose(y, (0, 2, 1, 3))          # (bs, H, seq, dh)

    Wq, Wk, Wv = proj(q, wq, bq), proj(kv, wk, bk), proj(kv, wv, bv)
    s = jnp.einsum('bhqd,bhkd->bhqk', Wq, Wk)
    if scale:
        s = s / math.sqrt(d_head)
    p = jax.nn.softmax(s, axis=-1)
    av = jnp.einsum('bhqk,bhkd->bhqd', p, Wv)
    av = jnp.transpose(av, (0, 2, 1, 3)).reshape(bs, S, n_heads * d_head)
    out = av @ wo + bo
    res = q + out
    mean = res.mean(-1, keepdims=True)
    var = ((res - mean) ** 2).mean(-1, keepdims=True)
    return (res - mean) / jnp.sqrt(var + eps) * gamma + beta


if __name__ == "__main__":
    # Small shapes implied by the module: (bs, seq, d_model)
    bs, seq, d_model = 2, 8, 32
    n_heads = 4
    d_head = d_model // n_heads
    HD = n_heads * d_head

    key = jax.random.PRNGKey(0)
    ks = jax.random.split(key, 12)

    q = jax.random.normal(ks[0], (bs, seq, d_model), jnp.float32)
    kv = jax.random.normal(ks[1], (bs, seq, d_model), jnp.float32)

    def lin_init(kw, kb, fan_in, shape_w, shape_b):
        bound = 1.0 / math.sqrt(fan_in)
        w = jax.random.uniform(kw, shape_w, jnp.float32, -bound, bound)
        b = jax.random.uniform(kb, shape_b, jnp.float32, -bound, bound)
        return w, b

    # weights stored (in_features, out_features) so that y = x @ W + b
    wq, bq = lin_init(ks[2], ks[3], d_model, (d_model, HD), (1, HD))
    wk, bk = lin_init(ks[4], ks[5], d_model, (d_model, HD), (1, HD))
    wv, bv = lin_init(ks[6], ks[7], d_model, (d_model, HD), (1, HD))
    wo, bo = lin_init(ks[8], ks[9], HD, (HD, d_model), (1, d_model))
    gamma = jnp.ones((1, d_model), jnp.float32)   # nn.LayerNorm default init
    beta = jnp.zeros((1, d_model), jnp.float32)

    params = (wq, bq, wk, bk, wv, bv, wo, bo, gamma, beta)

    out = multi_head_attention(q, kv, params, n_heads=n_heads, d_head=d_head)
    out = jax.block_until_ready(out)

    ref = _reference(q, kv, params, n_heads=n_heads, d_head=d_head)
    assert out.shape == (bs, seq, d_model)
    # bf16 MXU operands + approx reciprocal -> slightly looser tolerance than pure f32
    assert jnp.allclose(out, ref, atol=3e-2, rtol=3e-2), "mismatch vs reference"

    print("KERNEL_OK")
</pallas_src>

<mosaic_0001>
module attributes {stable_mosaic.version = 11 : i64} {
  func.func @_mha_kernel(%arg0: i32, %arg1: i32, %arg2: memref<1x8x32xf32, #tpu.memory_space<vmem>>, %arg3: memref<1x8x32xf32, #tpu.memory_space<vmem>>, %arg4: memref<32x32xbf16, #tpu.memory_space<vmem>>, %arg5: memref<1x32xf32, #tpu.memory_space<vmem>>, %arg6: memref<32x32xbf16, #tpu.memory_space<vmem>>, %arg7: memref<1x32xf32, #tpu.memory_space<vmem>>, %arg8: memref<32x32xbf16, #tpu.memory_space<vmem>>, %arg9: memref<1x32xf32, #tpu.memory_space<vmem>>, %arg10: memref<4x8x32xbf16, #tpu.memory_space<vmem>>, %arg11: memref<1x32xf32, #tpu.memory_space<vmem>>, %arg12: memref<1x32xf32, #tpu.memory_space<vmem>>, %arg13: memref<1x32xf32, #tpu.memory_space<vmem>>, %arg14: memref<1x8x32xf32, #tpu.memory_space<vmem>>) attributes {dimension_semantics = [#tpu.dimension_semantics<parallel>, #tpu.dimension_semantics<parallel>], iteration_bounds = array<i64: 2, 1>, scalar_prefetch = 0 : i64, scratch_operands = 0 : i64, tpu.core_type = #tpu.core_type<tc>, window_params = [{transform_indices = @transform_0, window_bounds = array<i64: 1, 8, 32>}, {transform_indices = @transform_1, window_bounds = array<i64: 1, 8, 32>}, {pipeline_mode = #tpu.pipeline_mode<synchronous>, transform_indices = @transform_2, window_bounds = array<i64: 32, 32>}, {pipeline_mode = #tpu.pipeline_mode<synchronous>, transform_indices = @transform_3, window_bounds = array<i64: 1, 32>}, {pipeline_mode = #tpu.pipeline_mode<synchronous>, transform_indices = @transform_4, window_bounds = array<i64: 32, 32>}, {pipeline_mode = #tpu.pipeline_mode<synchronous>, transform_indices = @transform_5, window_bounds = array<i64: 1, 32>}, {pipeline_mode = #tpu.pipeline_mode<synchronous>, transform_indices = @transform_6, window_bounds = array<i64: 32, 32>}, {pipeline_mode = #tpu.pipeline_mode<synchronous>, transform_indices = @transform_7, window_bounds = array<i64: 1, 32>}, {pipeline_mode = #tpu.pipeline_mode<synchronous>, transform_indices = @transform_8, window_bounds = array<i64: 4, 8, 32>}, {pipeline_mode = #tpu.pipeline_mode<synchronous>, transform_indices = @transform_9, window_bounds = array<i64: 1, 32>}, {pipeline_mode = #tpu.pipeline_mode<synchronous>, transform_indices = @transform_10, window_bounds = array<i64: 1, 32>}, {pipeline_mode = #tpu.pipeline_mode<synchronous>, transform_indices = @transform_11, window_bounds = array<i64: 1, 32>}, {transform_indices = @transform_12, window_bounds = array<i64: 1, 8, 32>}]} {
    %c0 = arith.constant 0 : index
    %c0_0 = arith.constant 0 : index
    %c0_1 = arith.constant 0 : index
    %0 = vector.load %arg2[%c0, %c0_0, %c0_1] : memref<1x8x32xf32, #tpu.memory_space<vmem>>, vector<1x8x32xf32>
    %1 = vector.shape_cast %0 : vector<1x8x32xf32> to vector<8x32xf32>
    %c0_2 = arith.constant 0 : index
    %c0_3 = arith.constant 0 : index
    %c0_4 = arith.constant 0 : index
    %2 = vector.load %arg2[%c0_2, %c0_3, %c0_4] : memref<1x8x32xf32, #tpu.memory_space<vmem>>, vector<1x8x32xf32>
    %3 = vector.shape_cast %2 : vector<1x8x32xf32> to vector<8x32xf32>
    %4 = arith.truncf %3 : vector<8x32xf32> to vector<8x32xbf16>
    %c0_5 = arith.constant 0 : index
    %c0_6 = arith.constant 0 : index
    %c0_7 = arith.constant 0 : index
    %5 = vector.load %arg3[%c0_5, %c0_6, %c0_7] : memref<1x8x32xf32, #tpu.memory_space<vmem>>, vector<1x8x32xf32>
    %6 = vector.shape_cast %5 : vector<1x8x32xf32> to vector<8x32xf32>
    %7 = arith.truncf %6 : vector<8x32xf32> to vector<8x32xbf16>
    %c0_8 = arith.constant 0 : index
    %c0_9 = arith.constant 0 : index
    %8 = vector.load %arg4[%c0_8, %c0_9] : memref<32x32xbf16, #tpu.memory_space<vmem>>, vector<32x32xbf16>
    %cst = arith.constant dense<0.000000e+00> : vector<8x32xf32>
    %9 = tpu.matmul %4, %8, %cst {dimension_numbers = #tpu.dot_dimension_numbers<[1], [0], [0], [1], [0, 0, 1, 1], [], []>} : vector<8x32xbf16>, vector<32x32xbf16>, vector<8x32xf32> -> vector<8x32xf32>
    %c0_10 = arith.constant 0 : index
    %c0_11 = arith.constant 0 : index
    %10 = vector.load %arg5[%c0_10, %c0_11] : memref<1x32xf32, #tpu.memory_space<vmem>>, vector<1x32xf32>
    %11 = vector.broadcast %10 : vector<1x32xf32> to vector<8x32xf32>
    %12 = arith.addf %9, %11 : vector<8x32xf32>
    %c0_12 = arith.constant 0 : index
    %c0_13 = arith.constant 0 : index
    %13 = vector.load %arg6[%c0_12, %c0_13] : memref<32x32xbf16, #tpu.memory_space<vmem>>, vector<32x32xbf16>
    %cst_14 = arith.constant dense<0.000000e+00> : vector<8x32xf32>
    %14 = tpu.matmul %7, %13, %cst_14 {dimension_numbers = #tpu.dot_dimension_numbers<[1], [0], [0], [1], [0, 0, 1, 1], [], []>} : vector<8x32xbf16>, vector<32x32xbf16>, vector<8x32xf32> -> vector<8x32xf32>
    %c0_15 = arith.constant 0 : index
    %c0_16 = arith.constant 0 : index
    %15 = vector.load %arg7[%c0_15, %c0_16] : memref<1x32xf32, #tpu.memory_space<vmem>>, vector<1x32xf32>
    %16 = vector.broadcast %15 : vector<1x32xf32> to vector<8x32xf32>
    %17 = arith.addf %14, %16 : vector<8x32xf32>
    %c0_17 = arith.constant 0 : index
    %c0_18 = arith.constant 0 : index
    %18 = vector.load %arg8[%c0_17, %c0_18] : memref<32x32xbf16, #tpu.memory_space<vmem>>, vector<32x32xbf16>
    %cst_19 = arith.constant dense<0.000000e+00> : vector<8x32xf32>
    %19 = tpu.matmul %7, %18, %cst_19 {dimension_numbers = #tpu.dot_dimension_numbers<[1], [0], [0], [1], [0, 0, 1, 1], [], []>} : vector<8x32xbf16>, vector<32x32xbf16>, vector<8x32xf32> -> vector<8x32xf32>
    %c0_20 = arith.constant 0 : index
    %c0_21 = arith.constant 0 : index
    %20 = vector.load %arg9[%c0_20, %c0_21] : memref<1x32xf32, #tpu.memory_space<vmem>>, vector<1x32xf32>
    %21 = vector.broadcast %20 : vector<1x32xf32> to vector<8x32xf32>
    %22 = arith.addf %19, %21 : vector<8x32xf32>
    %23 = vector.shape_cast %12 : vector<8x32xf32> to vector<8x4x8xf32>
    %24 = tpu.transpose %23, [1, 0, 2] : vector<8x4x8xf32> -> vector<4x8x8xf32>
    %25 = arith.truncf %24 : vector<4x8x8xf32> to vector<4x8x8xbf16>
    %26 = vector.shape_cast %17 : vector<8x32xf32> to vector<8x4x8xf32>
    %27 = tpu.transpose %26, [1, 0, 2] : vector<8x4x8xf32> -> vector<4x8x8xf32>
    %28 = arith.truncf %27 : vector<4x8x8xf32> to vector<4x8x8xbf16>
    %29 = vector.shape_cast %22 : vector<8x32xf32> to vector<8x4x8xf32>
    %30 = tpu.transpose %29, [1, 0, 2] : vector<8x4x8xf32> -> vector<4x8x8xf32>
    %31 = arith.truncf %30 : vector<4x8x8xf32> to vector<4x8x8xbf16>
    "tpu.trace_start"() <{level = 10 : i32, message = "hqd,hkd->hqk"}> : () -> ()
    %cst_22 = arith.constant dense<0.000000e+00> : vector<4x8x8xf32>
    %32 = tpu.matmul %25, %28, %cst_22 {dimension_numbers = #tpu.dot_dimension_numbers<[2], [2], [1], [1], [0, 0, 0, 1, 1, 1], [0], [0]>} : vector<4x8x8xbf16>, vector<4x8x8xbf16>, vector<4x8x8xf32> -> vector<4x8x8xf32>
    "tpu.trace_stop"() : () -> ()
    %cst_23 = arith.constant 0.353553385 : f32
    %33 = vector.broadcast %cst_23 : f32 to vector<4x8x8xf32>
    %34 = arith.mulf %32, %33 : vector<4x8x8xf32>
    %cst_24 = arith.constant dense<0xFF800000> : vector<4x8xf32>
    %35 = vector.multi_reduction <maximumf>, %34, %cst_24 [2] : vector<4x8x8xf32> to vector<4x8xf32>
    %36 = vector.shape_cast %35 : vector<4x8xf32> to vector<4x8x1xf32>
    %37 = vector.broadcast %36 : vector<4x8x1xf32> to vector<4x8x8xf32>
    %38 = arith.subf %34, %37 : vector<4x8x8xf32>
    %39 = math.exp %38 : vector<4x8x8xf32>
    %cst_25 = arith.constant dense<0.000000e+00> : vector<4x8xf32>
    %40 = vector.multi_reduction <add>, %39, %cst_25 [2] : vector<4x8x8xf32> to vector<4x8xf32>
    %41 = vector.shape_cast %40 : vector<4x8xf32> to vector<4x8x1xf32>
    %42 = tpu.reciprocal %41 {approx = true} : vector<4x8x1xf32> -> vector<4x8x1xf32>
    %43 = vector.broadcast %42 : vector<4x8x1xf32> to vector<4x8x8xf32>
    %44 = arith.mulf %39, %43 : vector<4x8x8xf32>
    %45 = arith.truncf %44 : vector<4x8x8xf32> to vector<4x8x8xbf16>
    "tpu.trace_start"() <{level = 10 : i32, message = "hqk,hkd->hqd"}> : () -> ()
    %cst_26 = arith.constant dense<0.000000e+00> : vector<4x8x8xf32>
    %46 = tpu.matmul %45, %31, %cst_26 {dimension_numbers = #tpu.dot_dimension_numbers<[2], [1], [1], [2], [0, 0, 0, 1, 1, 2], [0], [0]>} : vector<4x8x8xbf16>, vector<4x8x8xbf16>, vector<4x8x8xf32> -> vector<4x8x8xf32>
    "tpu.trace_stop"() : () -> ()
    %47 = arith.truncf %46 : vector<4x8x8xf32> to vector<4x8x8xbf16>
    %c0_27 = arith.constant 0 : index
    %c0_28 = arith.constant 0 : index
    %c0_29 = arith.constant 0 : index
    %48 = vector.load %arg10[%c0_27, %c0_28, %c0_29] : memref<4x8x32xbf16, #tpu.memory_space<vmem>>, vector<4x8x32xbf16>
    "tpu.trace_start"() <{level = 10 : i32, message = "hqd,hdo->hqo"}> : () -> ()
    %cst_30 = arith.constant dense<0.000000e+00> : vector<4x8x32xf32>
    %49 = tpu.matmul %47, %48, %cst_30 {dimension_numbers = #tpu.dot_dimension_numbers<[2], [1], [1], [2], [0, 0, 0, 1, 1, 2], [0], [0]>} : vector<4x8x8xbf16>, vector<4x8x32xbf16>, vector<4x8x32xf32> -> vector<4x8x32xf32>
    "tpu.trace_stop"() : () -> ()
    %cst_31 = arith.constant dense<0.000000e+00> : vector<8x32xf32>
    %50 = vector.multi_reduction <add>, %49, %cst_31 [0] : vector<4x8x32xf32> to vector<8x32xf32>
    %c0_32 = arith.constant 0 : index
    %c0_33 = arith.constant 0 : index
    %51 = vector.load %arg11[%c0_32, %c0_33] : memref<1x32xf32, #tpu.memory_space<vmem>>, vector<1x32xf32>
    %52 = vector.broadcast %51 : vector<1x32xf32> to vector<8x32xf32>
    %53 = arith.addf %50, %52 : vector<8x32xf32>
    %54 = arith.addf %1, %53 : vector<8x32xf32>
    %cst_34 = arith.constant dense<0.000000e+00> : vector<8xf32>
    %55 = vector.multi_reduction <add>, %54, %cst_34 [1] : vector<8x32xf32> to vector<8xf32>
    %56 = vector.shape_cast %55 : vector<8xf32> to vector<8x1xf32>
    %cst_35 = arith.constant 3.200000e+01 : f32
    %57 = vector.broadcast %cst_35 : f32 to vector<8x1xf32>
    %58 = arith.divf %56, %57 : vector<8x1xf32>
    %59 = vector.broadcast %58 : vector<8x1xf32> to vector<8x32xf32>
    %60 = arith.subf %54, %59 : vector<8x32xf32>
    %61 = arith.mulf %60, %60 : vector<8x32xf32>
    %cst_36 = arith.constant dense<0.000000e+00> : vector<8xf32>
    %62 = vector.multi_reduction <add>, %61, %cst_36 [1] : vector<8x32xf32> to vector<8xf32>
    %63 = vector.shape_cast %62 : vector<8xf32> to vector<8x1xf32>
    %cst_37 = arith.constant 3.200000e+01 : f32
    %64 = vector.broadcast %cst_37 : f32 to vector<8x1xf32>
    %65 = arith.divf %63, %64 : vector<8x1xf32>
    %cst_38 = arith.constant 9.99999974E-6 : f32
    %66 = vector.broadcast %cst_38 : f32 to vector<8x1xf32>
    %67 = arith.addf %65, %66 : vector<8x1xf32>
    %68 = math.rsqrt %67 : vector<8x1xf32>
    %69 = vector.broadcast %68 : vector<8x1xf32> to vector<8x32xf32>
    %70 = arith.mulf %60, %69 : vector<8x32xf32>
    %c0_39 = arith.constant 0 : index
    %c0_40 = arith.constant 0 : index
    %71 = vector.load %arg12[%c0_39, %c0_40] : memref<1x32xf32, #tpu.memory_space<vmem>>, vector<1x32xf32>
    %72 = vector.broadcast %71 : vector<1x32xf32> to vector<8x32xf32>
    %73 = arith.mulf %70, %72 : vector<8x32xf32>
    %c0_41 = arith.constant 0 : index
    %c0_42 = arith.constant 0 : index
    %74 = vector.load %arg13[%c0_41, %c0_42] : memref<1x32xf32, #tpu.memory_space<vmem>>, vector<1x32xf32>
    %75 = vector.broadcast %74 : vector<1x32xf32> to vector<8x32xf32>
    %76 = arith.addf %73, %75 : vector<8x32xf32>
    %c0_43 = arith.constant 0 : index
    %c0_44 = arith.constant 0 : index
    %c0_45 = arith.constant 0 : index
    %77 = vector.load %arg14[%c0_43, %c0_44, %c0_45] : memref<1x8x32xf32, #tpu.memory_space<vmem>>, vector<1x8x32xf32>
    %78 = vector.shape_cast %77 : vector<1x8x32xf32> to vector<8x32xf32>
    %79 = vector.shape_cast %76 : vector<8x32xf32> to vector<1x8x32xf32>
    tpu.vector_store %arg14[%c0_43, %c0_44, %c0_45], %79 {strides = array<i32>} : memref<1x8x32xf32, #tpu.memory_space<vmem>>, vector<1x8x32xf32>,
    return
  }
  func.func @transform_0(%arg0: i32, %arg1: i32) -> (i32, i32, i32) {
    %c0_i32 = arith.constant 0 : i32
    %c0_i32_0 = arith.constant 0 : i32
    return %arg0, %arg1, %c0_i32 : i32, i32, i32
  }
  func.func @transform_1(%arg0: i32, %arg1: i32) -> (i32, i32, i32) {
    %c0_i32 = arith.constant 0 : i32
    %c0_i32_0 = arith.constant 0 : i32
    %c0_i32_1 = arith.constant 0 : i32
    return %arg0, %c0_i32, %c0_i32_0 : i32, i32, i32
  }
  func.func @transform_2(%arg0: i32, %arg1: i32) -> (i32, i32) {
    %c0_i32 = arith.constant 0 : i32
    %c0_i32_0 = arith.constant 0 : i32
    %c0_i32_1 = arith.constant 0 : i32
    return %c0_i32, %c0_i32_0 : i32, i32
  }
  func.func @transform_3(%arg0: i32, %arg1: i32) -> (i32, i32) {
    %c0_i32 = arith.constant 0 : i32
    %c0_i32_0 = arith.constant 0 : i32
    %c0_i32_1 = arith.constant 0 : i32
    return %c0_i32, %c0_i32_0 : i32, i32
  }
  func.func @transform_4(%arg0: i32, %arg1: i32) -> (i32, i32) {
    %c0_i32 = arith.constant 0 : i32
    %c0_i32_0 = arith.constant 0 : i32
    %c0_i32_1 = arith.constant 0 : i32
    return %c0_i32, %c0_i32_0 : i32, i32
  }
  func.func @transform_5(%arg0: i32, %arg1: i32) -> (i32, i32) {
    %c0_i32 = arith.constant 0 : i32
    %c0_i32_0 = arith.constant 0 : i32
    %c0_i32_1 = arith.constant 0 : i32
    return %c0_i32, %c0_i32_0 : i32, i32
  }
  func.func @transform_6(%arg0: i32, %arg1: i32) -> (i32, i32) {
    %c0_i32 = arith.constant 0 : i32
    %c0_i32_0 = arith.constant 0 : i32
    %c0_i32_1 = arith.constant 0 : i32
    return %c0_i32, %c0_i32_0 : i32, i32
  }
  func.func @transform_7(%arg0: i32, %arg1: i32) -> (i32, i32) {
    %c0_i32 = arith.constant 0 : i32
    %c0_i32_0 = arith.constant 0 : i32
    %c0_i32_1 = arith.constant 0 : i32
    return %c0_i32, %c0_i32_0 : i32, i32
  }
  func.func @transform_8(%arg0: i32, %arg1: i32) -> (i32, i32, i32) {
    %c0_i32 = arith.constant 0 : i32
    %c0_i32_0 = arith.constant 0 : i32
    %c0_i32_1 = arith.constant 0 : i32
    %c0_i32_2 = arith.constant 0 : i32
    return %c0_i32, %c0_i32_0, %c0_i32_1 : i32, i32, i32
  }
  func.func @transform_9(%arg0: i32, %arg1: i32) -> (i32, i32) {
    %c0_i32 = arith.constant 0 : i32
    %c0_i32_0 = arith.constant 0 : i32
    %c0_i32_1 = arith.constant 0 : i32
    return %c0_i32, %c0_i32_0 : i32, i32
  }
  func.func @transform_10(%arg0: i32, %arg1: i32) -> (i32, i32) {
    %c0_i32 = arith.constant 0 : i32
    %c0_i32_0 = arith.constant 0 : i32
    %c0_i32_1 = arith.constant 0 : i32
    return %c0_i32, %c0_i32_0 : i32, i32
  }
  func.func @transform_11(%arg0: i32, %arg1: i32) -> (i32, i32) {
    %c0_i32 = arith.constant 0 : i32
    %c0_i32_0 = arith.constant 0 : i32
    %c0_i32_1 = arith.constant 0 : i32
    return %c0_i32, %c0_i32_0 : i32, i32
  }
  func.func @transform_12(%arg0: i32, %arg1: i32) -> (i32, i32, i32) {
    %c0_i32 = arith.constant 0 : i32
    %c0_i32_0 = arith.constant 0 : i32
    return %arg0, %arg1, %c0_i32 : i32, i32, i32
  }
}

</mosaic_0001>

<bundles_post_ra>
// kernel: tpu_custom_call.1
= control target key start
LH: loop header
LB: loop body
LE: loop exit
PB: predicated region body
PF: predicated region fallthrough
CT: control target
= control target key end

     0   :  { %s3098_s0 = inlined_call_operand.hbm [shape: f32[2,8,32], index: 0, kind: input, shape index: {}]   ;;  %s3099_s1 = inlined_call_operand.hbm [shape: f32[2,8,32], index: 1, kind: input, shape index: {}]   ;;  %s3100_s2 = inlined_call_operand.hbm [shape: bf16[32,32], index: 2, kind: input, shape index: {}]   ;;  %s3101_s3 = inlined_call_operand.vmem [shape: f32[1,32], index: 3, kind: input, shape index: {}]   ;;  %s3102_s4 = inlined_call_operand.hbm [shape: bf16[32,32], index: 4, kind: input, shape index: {}]   ;;  %s3103_s5 = inlined_call_operand.vmem [shape: f32[1,32], index: 5, kind: input, shape index: {}]   ;;  %s3104_s6 = inlined_call_operand.hbm [shape: bf16[32,32], index: 6, kind: input, shape index: {}]   ;;  %s3105_s7 = inlined_call_operand.vmem [shape: f32[1,32], index: 7, kind: input, shape index: {}]   ;;  %s3106_s8 = inlined_call_operand.hbm [shape: bf16[4,8,32], index: 8, kind: input, shape index: {}]   ;;  %s3107_s9 = inlined_call_operand.vmem [shape: f32[1,32], index: 9, kind: input, shape index: {}]   ;;  %s3108_s10 = inlined_call_operand.vmem [shape: f32[1,32], index: 10, kind: input, shape index: {}]   ;;  %s3109_s11 = inlined_call_operand.vmem [shape: f32[1,32], index: 11, kind: input, shape index: {}]   ;;  %s3110_s12 = inlined_call_operand.hbm [shape: f32[2,8,32], index: 12, kind: output, shape index: {}]  }
   0x1   :  { %3116 = sst [smem:[#allocation24_spill]] %s3098_s0 }
   0x2   :  { %3117 = sst [smem:[#allocation25_spill]] %s3100_s2 }
   0x3   :  { %3118 = sst [smem:[#allocation26_spill]] %s3102_s4 }
   0x4   :  { %3119 = sst [smem:[#allocation27_spill]] %s3104_s6 }
   0x5   :  { %3120 = sst [smem:[#allocation28_spill]] %s3106_s8 }
   0x6   :  { %3121 = sst [smem:[#allocation29_spill]] %s3110_s12 }
   0x7   :  { %17 = vsyncpa [#allocation3], 0 }
   0x8   :  { %19 = vsyncpa [#allocation3 + $0x1], 0 }
   0x9   :  { %20 = vsyncpa [#allocation6], 0 }
   0xa   :  { %22 = vsyncpa [#allocation6 + $0x1], 0 }
   0xb   :  { %23 = vsyncpa [#allocation9], 0 }
   0xc   :  { %24 = vsyncpa [#allocation12], 0 }
   0xd   :  { %25 = vsyncpa [#allocation4], 0 }
   0xe   :  { %27 = vsyncpa [#allocation4 + $0x1], 0  ;;  %s2675_s21 = smov 0   ;;  %s2677_s22 = smov 0  }
   0xf   :  { %s2679_s23 = smov 0   ;;  %s2681_s24 = smov 0  }
  0x10   :  { %s2683_s25 = smov 0   ;;  %s2685_s26 = smov 0  }
  0x11 LB: > { %3122 = sst [smem:[#allocation20_spill]] %s2572_s21  ;;  %s2706_s27 = sadd.s32 4294967295, %s2592_s26   ;;  %s2592_s26 = sphi %s2685_s26, %s33_s26   ;;  %s2588_s25 = sphi %s2683_s25, %s3149_s25   ;;  %s2584_s24 = sphi %s2681_s24, %s3148_s24   ;;  %s2580_s23 = sphi %s2679_s23, %s3152_s23   ;;  %s2576_s22 = sphi %s2677_s22, %s3151_s22   ;;  %s2572_s21 = sphi %s2675_s21, %s3150_s21  }
  0x12   : > { %3123 = sst [smem:[#allocation21_spill]] %s2588_s25  ;;  %p2011_p0 = scmp.ge.s32.totalorder %s2592_s26, 1 }
  0x13   : > { %p3115_p1 = scmp.eq.s32.totalorder %s2706_s27, 0  ;;  %p342_p2 = scmp.lt.s32.totalorder %s2592_s26, 3 }
  0x14   : > { %s2594_s29 = smov [#allocation7]   ;;  %s2595_s14 = smov [#allocation8]  }
  0x15   : > { %p2711_p3 = pnand %p2011_p0, %p342_p2  ;;  %s354_s30 = sshll.u32 %s2594_s29, 4  ;;  %s355_s30 = int_to_ptr.vmem [resolvable:$true] %s354_s30 }
  0x16   : > { %s370_s15 = sshll.u32 %s2595_s14, 4  ;;  %s2596_s16 = smov [#allocation10]   ;;  %s371_s15 = int_to_ptr.vmem [resolvable:$true] %s370_s15 }
  0x17   : > { %p2217_p4 = pneg %p2711_p3  ;;  %s386_s17 = sshll.u32 %s2596_s16, 4  ;;  %s387_s17 = int_to_ptr.vmem [resolvable:$true] %s386_s17 }
  0x18   : > { %s2347_s18 = scalar_lea.vmem %s355_s30, 256  ;;  %p2355_p11 = scmp.lt.s32.totalorder %s355_s30, %s355_s30 }
  0x19   : > { %p2720_p6 = pnand %p2217_p4, %p3115_p1  ;;  %p2348_p8 = scmp.ne.s32.totalorder %s355_s30, %s2347_s18 }
  0x1a   : > { %p2356_p12 = scmp.lt.s32.totalorder %s2347_s18, %s2347_s18 }
  0x1b   : > { %p2338_p7 = pneg %p2720_p6 }
  0x1c   : > { %p2357_p13 = por %p2356_p12, %p2355_p11 }
  0x1d   : > { %p2350_p9 = pnand %p2348_p8, %p2338_p7 }
  0x1f   : > { %p2351_p10 = pneg %p2350_p9 }
  0x21   : > { %p2358_p0 = pnand %p2357_p13, %p2351_p10 }
  0x23   : > { %2361 = shalt.err (!%p2358_p0)
}
  0x24   : > { %s2597_s19 = smov 64   ;;  %s2598_s20 = smov 4  }
  0x25   : > { %s3126_s2 = sld [smem:[#allocation25_spill]]  ;;  %s2373_s16 = scalar_lea.vmem %s371_s15, 256 }
  0x26   : > { %p2374_p2 = scmp.ne.s32.totalorder %s371_s15, %s2373_s16  ;;  %p2381_p9 = scmp.lt.s32.totalorder %s371_s15, %s371_s15 }
  0x27   : > { %p2382_p10 = scmp.lt.s32.totalorder %s2373_s16, %s2373_s16 }
  0x28   : > { %p2376_p4 = pnand %p2374_p2, %p2338_p7 }
  0x29   : > { %p2383_p11 = por %p2382_p10, %p2381_p9 }
  0x2a   : > { %p2377_p8 = pneg %p2376_p4 }
  0x2b   : > { %2220 = dma.hbm_to_vmem [thread:$0]  (!%p2720_p6), %s3126_s2, 256, %s355_s30, [#allocation6], %s2597_s19, %s2597_s19, %s2598_s20  }
  0x2c   : > { %p2384_p12 = pnand %p2383_p11, %p2377_p8 }
  0x2e   : > { %2387 = shalt.err (!%p2384_p12)
}
  0x2f   : > { %s3127_s4 = sld [smem:[#allocation26_spill]]  ;;  %s2399_s30 = scalar_lea.vmem %s387_s17, 256 }
  0x30   : > { %p2400_p13 = scmp.ne.s32.totalorder %s387_s17, %s2399_s30  ;;  %p2407_p4 = scmp.lt.s32.totalorder %s387_s17, %s387_s17 }
  0x31   : > { %p2408_p8 = scmp.lt.s32.totalorder %s2399_s30, %s2399_s30 }
  0x32   : > { %p2402_p0 = pnand %p2400_p13, %p2338_p7 }
  0x33   : > { %p2409_p9 = por %p2408_p8, %p2407_p4 }
  0x34   : > { %p2403_p2 = pneg %p2402_p0 }
  0x35   : > { %2223 = dma.hbm_to_vmem [thread:$0]  (!%p2720_p6), %s3127_s4, 256, %s371_s15, [#allocation9], %s2597_s19, %s2597_s19, %s2598_s20  }
  0x36   : > { %p2410_p10 = pnand %p2409_p9, %p2403_p2 }
  0x38   : > { %2413 = shalt.err (!%p2410_p10)
}
  0x39   : > { %s3128_s6 = sld [smem:[#allocation27_spill]]  ;;  %s2599_s15 = smov [#allocation11]  }
  0x3a   : > { %s402_s14 = sshll.u32 %s2599_s15, 4  ;;  %s403_s14 = int_to_ptr.vmem [resolvable:$true] %s402_s14 }
  0x3b   : > { %s2425_s16 = scalar_lea.vmem %s403_s14, 256  ;;  %p2433_p0 = scmp.lt.s32.totalorder %s403_s14, %s403_s14 }
  0x3c   : > { %p2426_p11 = scmp.ne.s32.totalorder %s403_s14, %s2425_s16  ;;  %p2434_p2 = scmp.lt.s32.totalorder %s2425_s16, %s2425_s16 }
  0x3e   : > { %p2428_p12 = pnand %p2426_p11, %p2338_p7  ;;  %p2435_p4 = por %p2434_p2, %p2433_p0 }
  0x3f   : > { %2226 = dma.hbm_to_vmem [thread:$0]  (!%p2720_p6), %s3128_s6, 256, %s387_s17, [#allocation9], %s2597_s19, %s2597_s19, %s2598_s20  }
  0x40   : > { %p2429_p13 = pneg %p2428_p12 }
  0x42   : > { %p2436_p8 = pnand %p2435_p4, %p2429_p13 }
  0x44   : > { %2439 = shalt.err (!%p2436_p8)
}
  0x45   : > { %s3129_s8 = sld [smem:[#allocation28_spill]]  ;;  %s2010_s13 = sadd.s32 4294967294, %s2592_s26  }
  0x46   : > { %s45_s30 = sadd.s32 1, %s2588_s25  ;;  %s54_s12 = sadd.s32 1, %s2580_s23 }
  0x47   : > { %p47_p7 = scmp.ge.s32.totalorder %s45_s30, 2  ;;  %p61_p9 = scmp.ne.s32.totalorder %s2580_s23, %s2576_s22 }
  0x48   : > { %p62_p10 = scmp.eq.s32.totalorder %s2592_s26, 0  ;;  %p67_p12 = scmp.ne.s32.totalorder %s2576_s22, %s2572_s21 }
  0x49   : > { %s3154_s30 = smov (%p47_p7, %s45_s30), 0  ;;  %p335_p4 = scmp.eq.s32.totalorder %s2010_s13, 1 }
  0x4a   : > { %3130 = sst [smem:[#allocation22_spill]] %s3154_s30  ;;  %p2778_p11 = por %p62_p10, %p61_p9 }
  0x4b   : > { %2229 = dma.hbm_to_vmem [thread:$0]  (!%p2720_p6), %s3129_s8, 256, %s403_s14, [#allocation12], %s2597_s19, %s2597_s19, %s2598_s20  }
  0x4c   : > { %s49_s19 = ssub.s32 %s2588_s25, %s3154_s30  ;;  %p329_p6 = scmp.eq.s32.totalorder %s2706_s27, 1 }
  0x4d   : > { %p52_p13 = scmp.eq.s32.totalorder %s49_s19, 0  ;;  %p2789_p0 = por %p3115_p1, %p67_p12 }
  0x4e   : > { %p2793_p2 = por %p329_p6, %p61_p9  ;;  %p2800_p8 = por %p335_p4, %p67_p12 }
  0x4f   : > { %s2798_s14 = scalar_select %p52_p13, %s2580_s23, %s54_s12  }
  0x50   : > { %p2245_p7 = scmp.lt.s32.totalorder %s2592_s26, 2  ;;  %s425_s17 = sand.u32 1, %s2580_s23  }
  0x51   : > { %3134 = sst [smem:[#allocation23_spill]] %s2798_s14  ;;  %s2018_s18 = sshll.u32 %s2588_s25, 7 }
  0x52   : > { %s2017_s19 = sshll.u32 %s425_s17, 3  ;;  %s3136_s0 = sld [smem:[#allocation24_spill]] }
  0x53   : > { %s429_s8 = scalar_lea.vmem [#allocation2], %s2017_s19  ;;  %p2812_p9 = pnand %p2245_p7, %p2778_p11 }
  0x54   : > { %s437_s30 = sshll.u32 %s429_s8, 4  ;;  %s2819_s14 = scalar_lea.hbm %s3099_s1, %s2018_s18  ;;  %s438_s30 = int_to_ptr.vmem [resolvable:$true] %s437_s30 }
  0x55   : > { %s426_s25 = scalar_lea.sflag [#allocation3], %s425_s17  ;;  %p2442_p10 = pneg %p2812_p9 }
  0x56   : > { %s2453_s2 = scalar_lea.vmem %s438_s30, 128  ;;  %s2600_s4 = smov [#allocation2]  }
  0x57   : > { %p2454_p12 = scmp.ne.s32.totalorder %s438_s30, %s2453_s2  ;;  %s2458_s8 = sshll.u32 %s2600_s4, 4  ;;  %s2459_s8 = int_to_ptr.vmem [resolvable:$false] %s2458_s8 }
  0x58   : > { %s435_s6 = scalar_lea.hbm %s3136_s0, %s2018_s18  ;;  %s2460_s29 = scalar_lea.vmem %s2459_s8, 256 }
  0x59   : > { %p2456_p6 = pnand %p2454_p12, %p2442_p10  ;;  %p2461_p13 = scmp.lt.s32.totalorder %s438_s30, %s2459_s8 }
  0x5a   : > { %p2462_p4 = scmp.lt.s32.totalorder %s2460_s29, %s2453_s2 }
  0x5b   : > { %p2457_p11 = pneg %p2456_p6 }
  0x5c   : > { %p2463_p7 = por %p2462_p4, %p2461_p13 }
  0x5e   : > { %p2464_p5 = pnand %p2463_p7, %p2457_p11 }
  0x60   : > { %2467 = shalt.err (!%p2464_p5)
}
  0x61   : > { %2233 = dma.hbm_to_vmem [thread:$0]  (!%p2812_p9), %s435_s6, 128, %s438_s30, %s426_s25  }
  0x62   : > { %s444_s17 = sand.u32 1, %s2592_s26   ;;  %s448_s18 = scalar_lea.vmem [#allocation5], %s2017_s19 }
  0x63   : > { %s455_s13 = sshll.u32 %s448_s18, 4  ;;  %s445_s12 = scalar_lea.sflag [#allocation6], %s444_s17  ;;  %s456_s13 = int_to_ptr.vmem [resolvable:$true] %s455_s13 }
  0x64   : > { %s2481_s0 = scalar_lea.vmem %s456_s13, 128  ;;  %s2601_s2 = smov [#allocation5]  }
  0x65   : > { %p2482_p12 = scmp.ne.s32.totalorder %s456_s13, %s2481_s0  ;;  %s2486_s4 = sshll.u32 %s2601_s2, 4  ;;  %s2487_s4 = int_to_ptr.vmem [resolvable:$false] %s2486_s4 }
  0x66   : > { %s2488_s8 = scalar_lea.vmem %s2487_s4, 256  ;;  %p2489_p5 = scmp.lt.s32.totalorder %s456_s13, %s2487_s4 }
  0x67   : > { %p2484_p6 = pnand %p2482_p12, %p2442_p10  ;;  %p2490_p11 = scmp.lt.s32.totalorder %s2488_s8, %s2481_s0 }
  0x69   : > { %p2485_p1 = pneg %p2484_p6  ;;  %p2491_p13 = por %p2490_p11, %p2489_p5 }
  0x6b   : > { %p2492_p4 = pnand %p2491_p13, %p2485_p1 }
  0x6d   : > { %2495 = shalt.err (!%p2492_p4)
}
  0x6e   : > { %2236 = dma.hbm_to_vmem [thread:$0]  (!%p2812_p9), %s2819_s14, 128, %s456_s13, %s445_s12  }
  0x6f   : > { %464 = sbr.rel (%p2711_p3) target bundleno = 1761 (0x6e1), region = 68  ;;  %s2838_s6 = sand.u32 (!%p2711_p3), 1, %s2576_s22  }
  0x70   : > { %s2841_s25 = sshll.u32 (!%p2711_p3), %s2838_s6, 3  ;;  %s467_s0 = scalar_lea.sflag (!%p2711_p3), [#allocation3], %s2838_s6 }
  0x71   : > { %s470_s30 = scalar_lea.vmem (!%p2711_p3), [#allocation2], %s2841_s25 }
  0x74   : > { %2547 = dma.done.wait (%p2789_p0), %s467_s0, 128  }
  0x75   : > { %2549 = vsyncadd (%p2789_p0), %s467_s0, 4294967168  ;;  %s475_s21 = sand.u32 1, %s2706_s27   ;;  %s479_s14 = scalar_lea.vmem [#allocation5], %s2841_s25 }
  0x76   : > { %s476_s28 = scalar_lea.sflag [#allocation6], %s475_s21 }
  0x77   : > { %2551 = dma.done.wait (%p2789_p0), %s476_s28, 128  }
  0x78   : > { %2553 = vsyncadd (%p2789_p0), %s476_s28, 4294967168  ;;  %p3138_p1 = scmp.eq.s32.totalorder %s2706_s27, 0 }
  0x7a   : > { %2555 = dma.done.wait (%p3138_p1), [#allocation6], 256   ;;  %p3139_p3 = pmov %p3138_p1 }
  0x7b   : > { %p3140_p9 = pmov %p3138_p1 }
  0x7c   : > { %2557 = vsyncadd (%p3139_p3), [#allocation6], 4294967040 }
  0x7d   : > { %2559 = dma.done.wait (%p3140_p9), [#allocation9], 512   ;;  %p3141_p10 = pmov %p3138_p1 }
  0x7e   : > { %p3142_p7 = pmov %p3138_p1 }
  0x7f   : > { %2561 = vsyncadd (%p3141_p10), [#allocation9], 4294966784 }
  0x80   : > { %2563 = dma.done.wait (%p3142_p7), [#allocation12], 256   ;;  %p3143_p12 = pmov %p3138_p1 }
  0x81   : > { %v2602_v0 = vmov 0.0   ;;  %vm2603_vm0 = vmmov 0   ;;  %v2312_v1 = vld [vmem:[#allocation8 + $0x8] sm:$0xff]   ;;  %v2313_v2 = vld [vmem:[#allocation7 + $0x8] sm:$0xff]   ;;  %v2314_v3 = vld [vmem:[#allocation8] sm:$0xff]   ;;  %vm569_vm1 = vcmask 261120   ;;  %v757_v25 = vlaneseq }
  0x82   : > { %2565 = vsyncadd (%p3143_p12), [#allocation12], 4294967040  ;;  %2107 = vmatprep.subr.bf16.mxu1 %v2602_v0  ;;  %2099 = vmatprep.subr.bf16.mxu0 %v2602_v0  ;;  %v2315_v4 = vld [vmem:[#allocation7] sm:$0xff]   ;;  %v544_v5 = vld [vmem:[%s479_s14] sm:$0xff]  ;;  %s2604_s17 = smov 104   ;;  %s2605_s18 = smov 120  }
  0x83   : > { %2111 = vmatprep.mubr.msk.bf16.mxu1 %vm2603_vm0, %v2602_v0  ;;  %2103 = vmatprep.mubr.msk.bf16.mxu0 %vm2603_vm0, %v2602_v0  ;;  %v2875_v6 = vld [vmem:[%s470_s30] sm:$0xff]  ;;  %v545_v7 = vpack.c.bf16 %v544_v5, %v544_v5  ;;  %s2606_s13 = smov 112   ;;  %v2607_v23 = vmov 1983009808   ;;  %v2608_v26 = vmov 1934713408  }
  0x84   : > { %2108 = vmatpush3.bf16.msra.mxu1 %v2312_v1  ;;  %2100 = vmatpush3.bf16.msra.mxu0 %v2313_v2  ;;  %v543_v8 = vpack.c.bf16 %v2875_v6, %v2875_v6  ;;  %v2033_v9 = vld [vmem:[%s3103_s5] ss:$0 sm:$0xff]  ;;  %v2316_v15 = vld [vmem:[#allocation10 + $0x8] sm:$0xff]   ;;  %v755_v24 = vunpack.c.l.s4 %v2607_v23  ;;  %v787_v27 = vunpack.c.l.s4 %v2608_v26  ;;  %v758_v29 = vshrl.u32 %v757_v25, 7  ;;  %s2063_s14 = sshll.u32 %s2584_s24, 7  ;;  %s540_s27 = scalar_lea.vmem [#allocation13], %s2841_s25 }
  0x85   : > { %2109 = vmatprep.subr.bf16.mxu1 %v2602_v0  ;;  %2101 = vmatprep.subr.bf16.mxu0 %v2602_v0  ;;  %v2029_v11 = vld [vmem:[%s3101_s3] ss:$0 sm:$0xff]  ;;  %vm1192_vm2 = vcmask 64512   ;;  %vm1432_vm3 = vcmask 1043456   ;;  %s1868_s20 = sshll.u32 %s540_s27, 4  ;;  %s2609_s2 = smov [#allocation13]   ;;  %s1869_s20 = int_to_ptr.vmem [resolvable:$true] %s1868_s20 }
  0x86   : > { %v2317_v21 = vld [vmem:[#allocation10] sm:$0xff]   ;;  %v756_v28 = vunpack.c.0.s8 %v755_v24  ;;  %v788_v32 = vunpack.c.0.s8 %v787_v27  ;;  %s2496_s12 = scalar_lea.vmem %s1869_s20, 128  ;;  %s2500_s4 = sshll.u32 %s2609_s2, 4  ;;  %s2501_s4 = int_to_ptr.vmem [resolvable:$false] %s2500_s4 }
  0x87   : > { %p2497_p0 = scmp.ne.s32.totalorder %s1869_s20, %s2496_s12  ;;  %s2502_s24 = scalar_lea.vmem %s2501_s4, 256 }
  0x88   : > { %2110 = vmatpush3.bf16.msra.mxu1 %v2314_v3  ;;  %2102 = vmatpush3.bf16.msra.mxu0 %v2315_v4  ;;  %v2904_v33 = vsub.s32 %v756_v28, %v758_v29  ;;  %v2906_v40 = vsub.s32 %v788_v32, %v758_v29  ;;  %p2503_p11 = scmp.lt.s32.totalorder %s1869_s20, %s2501_s4  ;;  %p2504_p13 = scmp.lt.s32.totalorder %s2502_s24, %s2496_s12 }
  0x89   : > { %2123 = vmatprep.subr.bf16.mxu1 %v2602_v0  ;;  %2115 = vmatprep.subr.bf16.mxu0 %v2602_v0  ;;  %p2498_p6 = pnand %p2497_p0, %p2793_p2 }
  0x8a   : > { %p2505_p4 = por %p2504_p13, %p2503_p11 }
  0x8b   : > { %2112 = vmatmul.mubr.msk.bf16.vlgmr.msra.gmra.mxu1 %vm569_vm1, %v545_v7  ;;  %2104 = vmatmul.mubr.msk.bf16.vlgmr.msra.gmra.mxu0 %vm569_vm1, %v543_v8  ;;  %p2499_p5 = pneg %p2498_p6 }
  0x8c   : > { %2125 = vmatprep.mubr.msk.bf16.mxu1 %vm2603_vm0, %v2602_v0  ;;  %2119 = vmatprep.mubr.msk.bf16.mxu0 %vm2603_vm0, %v2602_v0 }
  0x8d   : > { %2116 = vmatpush3.bf16.msra.mxu0 %v2316_v15  ;;  %p2506_p1 = pnand %p2505_p4, %p2499_p5 }
  0x8e   : > { %2117 = vmatprep.subr.bf16.mxu0 %v2602_v0 }
  0x91   : > { %2118 = vmatpush3.bf16.msra.mxu0 %v2317_v21 }
  0x92   : > { %2129 = vmatprep.subr.bf16.mxu0 %v2602_v0 }
  0x94   : > { %2120 = vmatmul.mubr.msk.bf16.vlgmr.msra.gmra.mxu0 %vm569_vm1, %v545_v7 }
  0x95   : > { %2131 = vmatprep.mubr.msk.bf16.mxu0 %vm2603_vm0, %v2602_v0 }
 0x14b   : > { %v673_v10 = vpop.f32.mrf.mxu1  ;;  %v607_v13 = vpop.f32.mrf.mxu0 }
 0x14c   : > { %v674_v12 = vadd.f32 %v2033_v9, %v673_v10  ;;  %v608_v16 = vadd.f32 %v2029_v11, %v607_v13 }
 0x14d   : > { %v2113_v14 = vpop.f32.mrf.mxu1  ;;  %v2105_v17 = vpop.f32.mrf.mxu0 }
 0x14e   : > { %899 = vrot.lane.b32.xlu1 %v674_v12, %s2604_s17  ;;  %893 = vrot.lane.b32.xlu0 %v674_v12, %s2605_s18 }
 0x14f   : > { %v676_v18 = vpop.f32.mrf.mxu1  ;;  %v610_v19 = vpop.f32.mrf.mxu0 }
 0x151   : > { %v2114_v20 = vpop.f32.mrf.mxu1  ;;  %v2106_v22 = vpop.f32.mrf.mxu0 }
 0x152   : > { %896 = vrot.lane.b32.xlu0 %v674_v12, %s2606_s13  ;;  %743 = vrot.lane.b32.xlu1 %v608_v16, %s2605_s18 }
 0x156   : > { %746 = vrot.lane.b32.xlu0 %v608_v16, %s2606_s13  ;;  %749 = vrot.lane.b32.xlu1 %v608_v16, %s2604_s17 }
 0x1c0   : > { %v900_v30 = vpop.permute.xlu1 %899  ;;  %v894_v31 = vpop.permute.xlu0 %893 }
 0x1c1   : > { %v918_v34 = vcombine.low %v894_v31, %v900_v30  ;;  %v919_v35 = vcombine.high %v894_v31, %v900_v30 }
 0x1c3   : > { %v926_v41 = vrot.slane %v918_v34, %v2904_v33  ;;  %v933_v42 = vrot.slane %v919_v35, %v2904_v33 }
 0x1c4   : > { %v897_v36 = vpop.permute.xlu0 %896  ;;  %v744_v37 = vpop.permute.xlu1 %743 }
 0x1c5   : > { %v902_v38 = vcombine.low %v674_v12, %v897_v36  ;;  %v903_v39 = vcombine.high %v674_v12, %v897_v36 }
 0x1c7   : > { %v910_v43 = vrot.slane %v902_v38, %v2904_v33  ;;  %v917_v44 = vrot.slane %v903_v39, %v2904_v33 }
 0x1c8   : > { %v747_v45 = vpop.permute.xlu0 %746  ;;  %v750_v46 = vpop.permute.xlu1 %749 }
 0x1c9   : > { %v934_v47 = vcombine.low %v910_v43, %v926_v41  ;;  %v935_v48 = vcombine.high %v910_v43, %v926_v41  ;;  %v950_v49 = vcombine.low %v917_v44, %v933_v42  ;;  %v951_v50 = vcombine.high %v917_v44, %v933_v42 }
 0x1ca   : > { %v752_v51 = vcombine.low %v608_v16, %v747_v45  ;;  %v753_v52 = vcombine.high %v608_v16, %v747_v45  ;;  %v768_v53 = vcombine.low %v744_v37, %v750_v46  ;;  %v769_v54 = vcombine.high %v744_v37, %v750_v46 }
 0x1cb   : > { %v942_v55 = vrot.slane %v934_v47, %v2906_v40  ;;  %v949_v56 = vrot.slane %v935_v48, %v2906_v40  ;;  %v958_v57 = vrot.slane %v950_v49, %v2906_v40  ;;  %v965_v58 = vrot.slane %v951_v50, %v2906_v40 }
 0x1cc   : > { %v760_v59 = vrot.slane %v752_v51, %v2904_v33  ;;  %v767_v60 = vrot.slane %v753_v52, %v2904_v33  ;;  %v776_v61 = vrot.slane %v768_v53, %v2904_v33  ;;  %v783_v62 = vrot.slane %v769_v54, %v2904_v33 }
 0x1cd   : > { %v970_v63 = vcombine.low %v942_v55, %v949_v56  ;;  %v2043_v1 = vcombine.high %v942_v55, %v949_v56  ;;  %v986_v2 = vcombine.low %v958_v57, %v965_v58  ;;  %v2044_v3 = vcombine.high %v958_v57, %v965_v58 }
 0x1ce   : > { %v784_v4 = vcombine.low %v760_v59, %v776_v61  ;;  %v785_v5 = vcombine.high %v760_v59, %v776_v61  ;;  %v800_v7 = vcombine.low %v767_v60, %v783_v62  ;;  %v801_v8 = vcombine.high %v767_v60, %v783_v62 }
 0x1cf   : > { %v977_v9 = vrot.slane %v970_v63, %v2904_v33  ;;  %v985_v10 = vrot.slane %v2043_v1, %v2904_v33  ;;  %v993_v11 = vrot.slane %v986_v2, %v2904_v33  ;;  %v1001_v12 = vrot.slane %v2044_v3, %v2904_v33  ;;  %v736_v63 = vpop.f32.mrf.mxu0 }
 0x1d0   : > { %v792_v13 = vrot.slane %v784_v4, %v2906_v40  ;;  %v799_v14 = vrot.slane %v785_v5, %v2906_v40  ;;  %v808_v15 = vrot.slane %v800_v7, %v2906_v40  ;;  %v815_v16 = vrot.slane %v801_v8, %v2906_v40 }
 0x1d1   : > { %v1002_v17 = vcombine.low %v977_v9, %v985_v10  ;;  %v1018_v18 = vcombine.low %v993_v11, %v1001_v12  ;;  %v1003_v19 = vcombine.high %v977_v9, %v985_v10  ;;  %v1019_v20 = vcombine.high %v993_v11, %v1001_v12  ;;  %v2121_v1 = vpop.f32.mrf.mxu0 }
 0x1d2   : > { %v820_v21 = vcombine.low %v792_v13, %v799_v14  ;;  %v2041_v22 = vcombine.high %v792_v13, %v799_v14  ;;  %v836_v23 = vcombine.low %v808_v15, %v815_v16  ;;  %v2042_v24 = vcombine.high %v808_v15, %v815_v16 }
 0x1d3   : > { %v1010_v25 = vrot.slane %v1002_v17, %v2906_v40  ;;  %v1026_v26 = vrot.slane %v1018_v18, %v2906_v40  ;;  %v1017_v34 = vrot.slane %v1003_v19, %v2906_v40  ;;  %v1033_v35 = vrot.slane %v1019_v20, %v2906_v40  ;;  %v739_v2 = vpop.f32.mrf.mxu0 }
 0x1d4   : > { %v827_v27 = vrot.slane %v820_v21, %v2904_v33  ;;  %v835_v28 = vrot.slane %v2041_v22, %v2904_v33  ;;  %v843_v29 = vrot.slane %v836_v23, %v2904_v33  ;;  %v851_v30 = vrot.slane %v2042_v24, %v2904_v33 }
 0x1d5   : > { %v1034_v31 = vcombine.low %v1010_v25, %v1026_v26  ;;  %v1035_v32 = vcombine.high %v1010_v25, %v1026_v26  ;;  %v1036_v45 = vcombine.low %v1017_v34, %v1033_v35  ;;  %v1037_v46 = vcombine.high %v1017_v34, %v1033_v35  ;;  %v2122_v3 = vpop.f32.mrf.mxu0 }
 0x1d6   : > { %v852_v36 = vcombine.low %v827_v27, %v835_v28  ;;  %v868_v37 = vcombine.low %v843_v29, %v851_v30  ;;  %v853_v47 = vcombine.high %v827_v27, %v835_v28  ;;  %v869_v48 = vcombine.high %v843_v29, %v851_v30  ;;  %v2037_v29 = vld [vmem:[%s3105_s7] ss:$0 sm:$0xff] }
 0x1d7   : > { %v1038_v38 = vpack.c.bf16 %v1034_v31, %v1034_v31  ;;  %v1039_v39 = vpack.c.bf16 %v1035_v32, %v1035_v32  ;;  %v1040_v51 = vpack.c.bf16 %v1036_v45, %v1036_v45  ;;  %v1041_v52 = vpack.c.bf16 %v1037_v46, %v1037_v46 }
 0x1d8   : > { %v860_v41 = vrot.slane %v852_v36, %v2906_v40  ;;  %v876_v42 = vrot.slane %v868_v37, %v2906_v40  ;;  %v867_v55 = vrot.slane %v853_v47, %v2906_v40  ;;  %v883_v56 = vrot.slane %v869_v48, %v2906_v40 }
 0x1d9   : > { %v1197_v43 = vsel %vm1192_vm2, %v1038_v38, 0  ;;  %v1243_v44 = vsel %vm1192_vm2, %v1039_v39, 0  ;;  %v1289_v57 = vsel %vm1192_vm2, %v1040_v51, 0  ;;  %v1335_v58 = vsel %vm1192_vm2, %v1041_v52, 0 }
 0x1da   : > { %2124 = vmatpush3.bf16.xpose.msra.mxu1 %v1197_v43  ;;  %2130 = vmatpush3.bf16.xpose.msra.mxu0 %v1243_v44  ;;  %v884_v49 = vcombine.low %v860_v41, %v876_v42  ;;  %v885_v50 = vcombine.high %v860_v41, %v876_v42  ;;  %v886_v59 = vcombine.low %v867_v55, %v883_v56 }
 0x1db   : > { %2135 = vmatprep.subr.bf16.mxu1 %v2602_v0  ;;  %2141 = vmatprep.subr.bf16.mxu0 %v2602_v0  ;;  %v887_v60 = vcombine.high %v867_v55, %v883_v56  ;;  %v737_v30 = vadd.f32 %v2037_v29, %v736_v63 }
 0x1dc   : > { %v888_v53 = vpack.c.bf16 %v884_v49, %v884_v49  ;;  %v889_v54 = vpack.c.bf16 %v885_v50, %v885_v50  ;;  %v890_v61 = vpack.c.bf16 %v886_v59, %v886_v59 }
 0x1dd   : > { %v891_v62 = vpack.c.bf16 %v887_v60, %v887_v60 }
 0x1e1   : > { %2126 = vmatmul.mubr.msk.bf16.vlgmr.msra.gmra.mxu1 %vm1192_vm2, %v888_v53  ;;  %2132 = vmatmul.mubr.msk.bf16.vlgmr.msra.gmra.mxu0 %vm1192_vm2, %v889_v54 }
 0x1e2   : > { %2136 = vmatpush3.bf16.xpose.msra.mxu1 %v1289_v57  ;;  %2142 = vmatpush3.bf16.xpose.msra.mxu0 %v1335_v58 }
 0x1e3   : > { %2137 = vmatprep.mubr.msk.bf16.mxu1 %vm2603_vm0, %v2602_v0  ;;  %2143 = vmatprep.mubr.msk.bf16.mxu0 %vm2603_vm0, %v2602_v0 }
 0x1e4   : > { %2147 = vmatprep.subr.bf16.mxu1 %v2602_v0  ;;  %2153 = vmatprep.subr.bf16.mxu0 %v2602_v0 }
 0x1e9   : > { %2138 = vmatmul.mubr.msk.bf16.vlgmr.msra.gmra.mxu1 %vm1192_vm2, %v890_v61  ;;  %2144 = vmatmul.mubr.msk.bf16.vlgmr.msra.gmra.mxu0 %vm1192_vm2, %v891_v62 }
 0x1ea   : > { %2149 = vmatprep.mubr.msk.bf16.mxu1 %vm2603_vm0, %v2602_v0  ;;  %2155 = vmatprep.mubr.msk.bf16.mxu0 %vm2603_vm0, %v2602_v0 }
 0x2a1   : > { %v1233_v4 = vpop.f32.mrf.mxu1  ;;  %v1279_v5 = vpop.f32.mrf.mxu0 }
 0x2a2   : > { %v1377_v7 = vmul.f32 0.35355338, %v1233_v4  ;;  %v1378_v8 = vmul.f32 0.35355338, %v1279_v5 }
 0x2a3   : > { %v2127_v9 = vpop.f32.mrf.mxu1  ;;  %v2133_v10 = vpop.f32.mrf.mxu0 }
 0x2a4   : > { %v1381_v11 = vsel %vm1192_vm2, %v1377_v7, -inf  ;;  %v1384_v12 = vsel %vm1192_vm2, %v1378_v8, -inf }
 0x2a5   : > { %1382 = vmax.xlane.f32.xlu0 %v1381_v11  ;;  %v1236_v13 = vpop.f32.mrf.mxu1  ;;  %1385 = vmax.xlane.f32.xlu1 %v1384_v12  ;;  %v1282_v14 = vpop.f32.mrf.mxu0 }
 0x2a7   : > { %v2128_v15 = vpop.f32.mrf.mxu1  ;;  %v2134_v16 = vpop.f32.mrf.mxu0 }
 0x2a9   : > { %v1325_v17 = vpop.f32.mrf.mxu1  ;;  %v1371_v18 = vpop.f32.mrf.mxu0 }
 0x2aa   : > { %v1379_v19 = vmul.f32 0.35355338, %v1325_v17  ;;  %v1380_v22 = vmul.f32 0.35355338, %v1371_v18 }
 0x2ab   : > { %v2139_v20 = vpop.f32.mrf.mxu1  ;;  %v2145_v21 = vpop.f32.mrf.mxu0 }
 0x2ac   : > { %v1387_v23 = vsel %vm1192_vm2, %v1379_v19, -inf  ;;  %v1390_v28 = vsel %vm1192_vm2, %v1380_v22, -inf }
 0x2ad   : > { %1388 = vmax.xlane.f32.xlu0 %v1387_v23  ;;  %v1328_v24 = vpop.f32.mrf.mxu1  ;;  %v1374_v25 = vpop.f32.mrf.mxu0 }
 0x2af   : > { %v2140_v26 = vpop.f32.mrf.mxu1  ;;  %v2146_v27 = vpop.f32.mrf.mxu0 }
 0x2b1   : > { %1391 = vmax.xlane.f32.xlu0 %v1390_v28 }
 0x2b6   : > { %1043 = vrot.lane.b32.xlu1 %v737_v30, %s2605_s18 }
 0x32e   : > { %v1383_v31 = vpop.xlane.xlu0 %1382  ;;  %v1386_v32 = vpop.xlane.xlu1 %1385 }
 0x32f   : > { %v1393_v34 = vsub.f32 %v1377_v7, %v1383_v31  ;;  %v1394_v35 = vsub.f32 %v1378_v8, %v1386_v32 }
 0x331   : > { %v1397_v36 = vmul.f32 1.442695, %v1393_v34  ;;  %v1399_v37 = vmul.f32 1.442695, %v1394_v35 }
 0x332   : > { %v1044_v53 = vpop.permute.xlu1 %1043 }
 0x333   : > { %2318 = vpow2.f32 %v1397_v36 }
 0x334   : > { %2320 = vpow2.f32 %v1399_v37 }
 0x336   : > { %v1389_v43 = vpop.xlane.xlu0 %1388 }
 0x337   : > { %v1395_v45 = vsub.f32 %v1379_v19, %v1389_v43 }
 0x339   : > { %v1401_v47 = vmul.f32 1.442695, %v1395_v45 }
 0x33a   : > { %v1392_v44 = vpop.xlane.xlu0 %1391 }
 0x33b   : > { %v1396_v46 = vsub.f32 %v1380_v22, %v1392_v44  ;;  %2322 = vpow2.f32 %v1401_v47 }
 0x33d   : > { %v1403_v48 = vmul.f32 1.442695, %v1396_v46 }
 0x33f   : > { %2324 = vpow2.f32 %v1403_v48 }
 0x340   : > { %v2968_v38 = vpop.eup %2318 }
 0x341   : > { %v2970_v39 = vpop.eup %2320  ;;  %v1405_v41 = vsel %vm1192_vm2, %v2968_v38, 0.0 }
 0x342   : > { %1406 = vadd.xlane.f32.xlu1 %v1405_v41  ;;  %v1408_v42 = vsel %vm1192_vm2, %v2970_v39, 0.0 }
 0x343   : > { %1409 = vadd.xlane.f32.xlu0 %v1408_v42 }
 0x348   : > { %v2978_v49 = vpop.eup %2322 }
 0x349   : > { %v1411_v51 = vsel %vm1192_vm2, %v2978_v49, 0.0 }
 0x34c   : > { %v2980_v50 = vpop.eup %2324 }
 0x34d   : > { %v1414_v52 = vsel %vm1192_vm2, %v2980_v50, 0.0 }
 0x353   : > { %1049 = vrot.lane.b32.xlu1 %v737_v30, %s2604_s17  ;;  %s3144_s17 = sld [smem:[#allocation29_spill]] }
 0x359   : > { %1046 = vrot.lane.b32.xlu0 %v737_v30, %s2606_s13  ;;  %s1866_s18 = scalar_lea.hbm %s3144_s17, %s2063_s14  ;;  %s1854_s13 = scalar_lea.sflag [#allocation4], %s2838_s6 }
 0x377   : > { %1412 = vadd.xlane.f32.xlu1 %v1411_v51 }
 0x378   : > { %1415 = vadd.xlane.f32.xlu0 %v1414_v52 }
 0x3cb   : > { %v1407_v54 = vpop.xlane.xlu1 %1406 }
 0x3cc   : > { %v1410_v55 = vpop.xlane.xlu0 %1409  ;;  %2326 = vrcp.f32 %v1407_v54 }
 0x3cd   : > { %2328 = vrcp.f32 %v1410_v55 }
 0x3cf   : > { %v1050_v56 = vpop.permute.xlu1 %1049 }
 0x3d0   : > { %v1068_v57 = vcombine.low %v1044_v53, %v1050_v56  ;;  %v1069_v58 = vcombine.high %v1044_v53, %v1050_v56  ;;  %v1047_v59 = vpop.permute.xlu0 %1046  ;;  %v1618_v56 = vld [vmem:[#allocation11] sm:$0xf] }
 0x3d1   : > { %v1052_v60 = vcombine.low %v737_v30, %v1047_v59  ;;  %v1053_v61 = vcombine.high %v737_v30, %v1047_v59  ;;  %v1621_v59 = vld [vmem:[#allocation11 + $0xc] sm:$0xf] }
 0x3d2   : > { %v1076_v62 = vrot.slane %v1068_v57, %v2904_v33  ;;  %v1083_v63 = vrot.slane %v1069_v58, %v2904_v33  ;;  %v1619_v57 = vld [vmem:[#allocation11 + $0x4] sm:$0xf]  ;;  %v1626_v58 = vsel %vm1432_vm3, %v1618_v56, 0 }
 0x3d3   : > { %v1060_v1 = vrot.slane %v1052_v60, %v2904_v33  ;;  %v1067_v2 = vrot.slane %v1053_v61, %v2904_v33 }
 0x3d5   : > { %v1084_v3 = vcombine.low %v1060_v1, %v1076_v62  ;;  %v1085_v4 = vcombine.high %v1060_v1, %v1076_v62  ;;  %v1100_v5 = vcombine.low %v1067_v2, %v1083_v63  ;;  %v1101_v7 = vcombine.high %v1067_v2, %v1083_v63 }
 0x3d6   : > { %v1764_v2 = vsel %vm1432_vm3, %v1621_v59, 0 }
 0x3d7   : > { %v1092_v8 = vrot.slane %v1084_v3, %v2906_v40  ;;  %v1099_v9 = vrot.slane %v1085_v4, %v2906_v40  ;;  %v1108_v10 = vrot.slane %v1100_v5, %v2906_v40  ;;  %v1115_v11 = vrot.slane %v1101_v7, %v2906_v40 }
 0x3d9   : > { %v1120_v12 = vcombine.low %v1092_v8, %v1099_v9  ;;  %v2045_v13 = vcombine.high %v1092_v8, %v1099_v9  ;;  %v1136_v14 = vcombine.low %v1108_v10, %v1115_v11  ;;  %v2046_v15 = vcombine.high %v1108_v10, %v1115_v11  ;;  %v2327_v24 = vpop.eup %2326 }
 0x3da   : > { %v2329_v29 = vpop.eup %2328  ;;  %v1421_v36 = vmul.f32 %v2327_v24, %v2968_v38 }
 0x3db   : > { %v1127_v16 = vrot.slane %v1120_v12, %v2904_v33  ;;  %v1135_v17 = vrot.slane %v2045_v13, %v2904_v33  ;;  %v1143_v18 = vrot.slane %v1136_v14, %v2904_v33  ;;  %v1151_v19 = vrot.slane %v2046_v15, %v2904_v33 }
 0x3dc   : > { %v1422_v37 = vmul.f32 %v2329_v29, %v2970_v39 }
 0x3dd   : > { %v1152_v20 = vcombine.low %v1127_v16, %v1135_v17  ;;  %v1168_v21 = vcombine.low %v1143_v18, %v1151_v19  ;;  %v1153_v22 = vcombine.high %v1127_v16, %v1135_v17  ;;  %v1169_v23 = vcombine.high %v1143_v18, %v1151_v19 }
 0x3de   : > { %v1426_v45 = vpack.c.bf16 %v1422_v37, %v1422_v37 }
 0x3df   : > { %v1160_v25 = vrot.slane %v1152_v20, %v2906_v40  ;;  %v1176_v26 = vrot.slane %v1168_v21, %v2906_v40  ;;  %v1167_v27 = vrot.slane %v1153_v22, %v2906_v40  ;;  %v1183_v28 = vrot.slane %v1169_v23, %v2906_v40 }
 0x3e0   : > { %v1425_v40 = vpack.c.bf16 %v1421_v36, %v1421_v36  ;;  %v2059_v36 = vld [vmem:[%s3107_s9] ss:$0 sm:$0xff] }
 0x3e1   : > { %v1184_v30 = vcombine.low %v1160_v25, %v1176_v26  ;;  %v1185_v31 = vcombine.high %v1160_v25, %v1176_v26  ;;  %v1186_v32 = vcombine.low %v1167_v27, %v1183_v28  ;;  %v1187_v34 = vcombine.high %v1167_v27, %v1183_v28 }
 0x3e3   : > { %v1188_v33 = vpack.c.bf16 %v1184_v30, %v1184_v30  ;;  %v1189_v35 = vpack.c.bf16 %v1185_v31, %v1185_v31  ;;  %v1190_v43 = vpack.c.bf16 %v1186_v32, %v1186_v32  ;;  %v1191_v44 = vpack.c.bf16 %v1187_v34, %v1187_v34 }
 0x3e5   : > { %v1434_v41 = vsel %vm1432_vm3, %v1188_v33, 0  ;;  %v1480_v42 = vsel %vm1432_vm3, %v1189_v35, 0  ;;  %v1526_v38 = vsel %vm1432_vm3, %v1190_v43, 0  ;;  %v1572_v39 = vsel %vm1432_vm3, %v1191_v44, 0 }
 0x3e6   : > { %2148 = vmatpush3.bf16.msra.mxu1 %v1434_v41  ;;  %2154 = vmatpush3.bf16.msra.mxu0 %v1480_v42 }
 0x3e7   : > { %2159 = vmatprep.subr.bf16.mxu1 %v2602_v0  ;;  %2165 = vmatprep.subr.bf16.mxu0 %v2602_v0 }
 0x3e9   : > { %2150 = vmatmul.mubr.msk.bf16.vlgmr.msra.gmra.mxu1 %vm1192_vm2, %v1425_v40  ;;  %2156 = vmatmul.mubr.msk.bf16.vlgmr.msra.gmra.mxu0 %vm1192_vm2, %v1426_v45 }
 0x3ea   : > { %2160 = vmatpush3.bf16.msra.mxu1 %v1526_v38  ;;  %2166 = vmatpush3.bf16.msra.mxu0 %v1572_v39 }
 0x3eb   : > { %2161 = vmatprep.mubr.msk.bf16.mxu1 %vm2603_vm0, %v2602_v0  ;;  %2167 = vmatprep.mubr.msk.bf16.mxu0 %vm2603_vm0, %v2602_v0 }
 0x3ec   : > { %2171 = vmatprep.subr.bf16.mxu1 %v2602_v0  ;;  %2177 = vmatprep.subr.bf16.mxu0 %v2602_v0 }
 0x400   : > { %v1413_v46 = vpop.xlane.xlu1 %1412 }
 0x401   : > { %2330 = vrcp.f32 %v1413_v46  ;;  %v1416_v47 = vpop.xlane.xlu0 %1415 }
 0x402   : > { %2332 = vrcp.f32 %v1416_v47 }
 0x40e   : > { %v2331_v48 = vpop.eup %2330 }
 0x40f   : > { %v2333_v51 = vpop.eup %2332  ;;  %v1423_v52 = vmul.f32 %v2331_v48, %v2978_v49  ;;  %v1672_v49 = vsel %vm1432_vm3, %v1619_v57, 0 }
 0x410   : > { %v1424_v53 = vmul.f32 %v2333_v51, %v2980_v50  ;;  %v1620_v50 = vld [vmem:[#allocation11 + $0x8] sm:$0xf] }
 0x411   : > { %v1427_v54 = vpack.c.bf16 %v1423_v52, %v1423_v52  ;;  %v1718_v1 = vsel %vm1432_vm3, %v1620_v50, 0 }
 0x412   : > { %v1428_v55 = vpack.c.bf16 %v1424_v53, %v1424_v53 }
 0x413   : > { %2162 = vmatmul.mubr.msk.bf16.vlgmr.msra.gmra.mxu1 %vm1192_vm2, %v1427_v54 }
 0x414   : > { %2168 = vmatmul.mubr.msk.bf16.vlgmr.msra.gmra.mxu0 %vm1192_vm2, %v1428_v55  ;;  %2173 = vmatprep.mubr.msk.bf16.mxu1 %vm2603_vm0, %v2602_v0 }
 0x415   : > { %2179 = vmatprep.mubr.msk.bf16.mxu0 %vm2603_vm0, %v2602_v0  ;;  %2172 = vmatpush3.bf16.msra.mxu1 %v1626_v58  ;;  %v2061_v58 = vld [vmem:[%s3109_s11] ss:$0 sm:$0xff] }
 0x416   : > { %2178 = vmatpush3.bf16.msra.mxu0 %v1672_v49  ;;  %2183 = vmatprep.subr.bf16.mxu1 %v2602_v0 }
 0x417   : > { %2189 = vmatprep.subr.bf16.mxu0 %v2602_v0 }
 0x4a9   : > { %v1470_v60 = vpop.f32.mrf.mxu1  ;;  %v1516_v61 = vpop.f32.mrf.mxu0 }
 0x4aa   : > { %v1614_v62 = vpack.c.bf16 %v1470_v60, %v1470_v60  ;;  %v1615_v63 = vpack.c.bf16 %v1516_v61, %v1516_v61 }
 0x4ab   : > { %v2151_v3 = vpop.f32.mrf.mxu1  ;;  %v2157_v4 = vpop.f32.mrf.mxu0 }
 0x4ac   : > { %2174 = vmatmul.mubr.msk.bf16.vlgmr.msra.gmra.mxu1 %vm1192_vm2, %v1614_v62  ;;  %2180 = vmatmul.mubr.msk.bf16.vlgmr.msra.gmra.mxu0 %vm1192_vm2, %v1615_v63 }
 0x4ad   : > { %v1473_v5 = vpop.f32.mrf.mxu1  ;;  %v1519_v7 = vpop.f32.mrf.mxu0  ;;  %2184 = vmatpush3.bf16.msra.mxu1 %v1718_v1  ;;  %2190 = vmatpush3.bf16.msra.mxu0 %v1764_v2 }
 0x4ae   : > { %2185 = vmatprep.mubr.msk.bf16.mxu1 %vm2603_vm0, %v2602_v0  ;;  %2191 = vmatprep.mubr.msk.bf16.mxu0 %vm2603_vm0, %v2602_v0 }
 0x4af   : > { %v2152_v8 = vpop.f32.mrf.mxu1  ;;  %v2158_v9 = vpop.f32.mrf.mxu0 }
 0x4d3   : > { %v1562_v10 = vpop.f32.mrf.mxu1 }
 0x4d4   : > { %v1616_v11 = vpack.c.bf16 %v1562_v10, %v1562_v10  ;;  %v1608_v12 = vpop.f32.mrf.mxu0 }
 0x4d5   : > { %v1617_v13 = vpack.c.bf16 %v1608_v12, %v1608_v12  ;;  %v2163_v14 = vpop.f32.mrf.mxu1 }
 0x4d6   : > { %v2169_v15 = vpop.f32.mrf.mxu0  ;;  %2186 = vmatmul.mubr.msk.bf16.vlgmr.msra.gmra.mxu1 %vm1192_vm2, %v1616_v11 }
 0x4d7   : > { %2192 = vmatmul.mubr.msk.bf16.vlgmr.msra.gmra.mxu0 %vm1192_vm2, %v1617_v13  ;;  %v1565_v16 = vpop.f32.mrf.mxu1 }
 0x4d8   : > { %v1611_v17 = vpop.f32.mrf.mxu0 }
 0x4d9   : > { %v2164_v18 = vpop.f32.mrf.mxu1 }
 0x4da   : > { %v2170_v19 = vpop.f32.mrf.mxu0 }
 0x56c   : > { %v1662_v20 = vpop.f32.mrf.mxu1  ;;  %v1708_v21 = vpop.f32.mrf.mxu0 }
 0x56d   : > { %v1806_v27 = vsel %vm569_vm1, %v1662_v20, 0.0  ;;  %v1807_v28 = vsel %vm569_vm1, %v1708_v21, 0.0 }
 0x56e   : > { %v2175_v22 = vpop.f32.mrf.mxu1  ;;  %v2181_v0 = vpop.f32.mrf.mxu0  ;;  %v1808_v29 = vadd.f32 %v1807_v28, %v1806_v27 }
 0x570   : > { %v1665_v23 = vpop.f32.mrf.mxu1  ;;  %v1711_v24 = vpop.f32.mrf.mxu0 }
 0x572   : > { %v2176_v25 = vpop.f32.mrf.mxu1  ;;  %v2182_v26 = vpop.f32.mrf.mxu0 }
 0x596   : > { %v1754_v30 = vpop.f32.mrf.mxu1 }
 0x597   : > { %v1809_v31 = vsel %vm569_vm1, %v1754_v30, 0.0  ;;  %v1800_v32 = vpop.f32.mrf.mxu0 }
 0x598   : > { %v1810_v34 = vadd.f32 %v1809_v31, %v1808_v29  ;;  %v2187_v33 = vpop.f32.mrf.mxu1  ;;  %v1811_v35 = vsel %vm569_vm1, %v1800_v32, 0.0 }
 0x599   : > { %v2193_v37 = vpop.f32.mrf.mxu0 }
 0x59a   : > { %v1812_v41 = vadd.f32 %v1811_v35, %v1810_v34  ;;  %v1757_v42 = vpop.f32.mrf.mxu1 }
 0x59b   : > { %v1803_v43 = vpop.f32.mrf.mxu0 }
 0x59c   : > { %v1820_v44 = vadd.f32 %v2059_v36, %v1812_v41  ;;  %v2188_v40 = vpop.f32.mrf.mxu1 }
 0x59d   : > { %v2194_v45 = vpop.f32.mrf.mxu0 }
 0x59e   : > { %v1821_v38 = vadd.f32 %v1820_v44, %v2875_v6  ;;  %v2060_v6 = vld [vmem:[%s3108_s10] ss:$0 sm:$0xff] }
 0x5a0   : > { %v1822_v39 = vsel %vm569_vm1, %v1821_v38, 0.0 }
 0x5a1   : > { %1823 = vadd.xlane.f32.xlu0 %v1822_v39 }
 0x62a   : > { %v1824_v46 = vpop.xlane.xlu0 %1823 }
 0x62b   : > { %v1826_v47 = vmul.f32 0.03125, %v1824_v46 }
 0x62d   : > { %v1827_v48 = vsub.f32 %v1821_v38, %v1826_v47 }
 0x62f   : > { %v1828_v51 = vmul.f32 %v1827_v48, %v1827_v48 }
 0x631   : > { %v1829_v52 = vsel %vm569_vm1, %v1828_v51, 0.0 }
 0x632   : > { %1830 = vadd.xlane.f32.xlu1 %v1829_v52 }
 0x6bb   : > { %v1831_v53 = vpop.xlane.xlu1 %1830 }
 0x6bc   : > { %v1832_v54 = vmul.f32 0.03125, %v1831_v53 }
 0x6be   : > { %v1833_v55 = vadd.f32 1e-05, %v1832_v54 }
 0x6c0   : > { %2334 = vrsqrt.f32 %v1833_v55 }
 0x6cd   : > { %v2335_v56 = vpop.eup %2334 }
 0x6ce   : > { %v1835_v57 = vmul.f32 %v2335_v56, %v1827_v48 }
 0x6d0   : > { %v1843_v49 = vmul.f32 %v2060_v6, %v1835_v57 }
 0x6d2   : > { %v1851_v50 = vadd.f32 %v2061_v58, %v1843_v49 }
 0x6d4   : > { %1852 = vst.msk [vmem:[%s540_s27] sm:$0xff] %vm569_vm1, %v1851_v50 }
 0x6d5   : > { %2509 = shalt.err (!%p2506_p1)
}
 0x6d6   : > { %s2510_s25 = scalar_lea.hbm %s1866_s18, 128  ;;  %s2514_s0 = scalar_lea.hbm %s3144_s17, 256 }
 0x6d7   : > { %p2511_p3 = scmp.ne.s32.totalorder %s1866_s18, %s2510_s25  ;;  %p2515_p7 = scmp.lt.s32.totalorder %s1866_s18, %s3144_s17 }
 0x6d8   : > { %p2516_p12 = scmp.lt.s32.totalorder %s2514_s0, %s2510_s25 }
 0x6d9   : > { %p2512_p9 = pnand %p2511_p3, %p2793_p2 }
 0x6da   : > { %p2517_p0 = por %p2516_p12, %p2515_p7 }
 0x6db   : > { %p2513_p10 = pneg %p2512_p9 }
 0x6dd   : > { %p2518_p6 = pnand %p2517_p0, %p2513_p10 }
 0x6df   : > { %2521 = shalt.err (!%p2518_p6)
}
 0x6e0   : > { %2215 = dma.vmem_to_hbm [thread:$0]  (%p2793_p2), %s1869_s20, 128, %s1866_s18, %s1854_s13  }
 0x6e1 PF: > { %s3145_s28 = sld [smem:[#allocation20_spill]]  ;;  %p3146_p5 = scmp.ge.s32.totalorder %s2592_s26, 2 }
 0x6e3   : > { %p2238_p11 = pnand %p3146_p5, %p2800_p8 }
 0x6e5   : > { %p2239_p13 = pneg %p2238_p11 }
 0x6e7   : > { %s1880_s14 = sand.u32 1, %s3145_s28  }
 0x6e8   : > { %s1881_s27 = scalar_lea.sflag [#allocation4], %s1880_s14 }
 0x6e9   : > { %2567 = dma.done.wait (%p2239_p13), %s1881_s27, 128  }
 0x6ea   : > { %2569 = vsyncadd (%p2239_p13), %s1881_s27, 4294967168  ;;  %s33_s26 = sadd.s32 1, %s2592_s26   ;;  %s3147_s19 = sld [smem:[#allocation23_spill]] }
 0x6eb   : > { %p30_p4 = scmp.ge.s32.totalorder %s33_s26, 4   ;;  %s3148_s24 = sld [smem:[#allocation21_spill]] }
 0x6ec   : > { %s3149_s25 = sld [smem:[#allocation22_spill]]  ;;  %s3150_s21 = smov %s2576_s22 }
 0x6ed   : > { %s3151_s22 = smov %s2580_s23  ;;  %32 = sbr.rel (!%p30_p4) target bundleno = 17 (0x11), region = 142 }
 0x6f0   : > { %s3152_s23 = smov %s3147_s19 }
 0x6f2   :  { %1886 = vsyncpa [#allocation3], 1 }
 0x6f3   :  { %1888 = vsyncpa [#allocation3 + $0x1], 1 }
 0x6f4   :  { %1889 = vsyncpa [#allocation6], 1 }
 0x6f5   :  { %1891 = vsyncpa [#allocation6 + $0x1], 1 }
 0x6f6   :  { %1892 = vsyncpa [#allocation9], 1 }
 0x6f7   :  { %1893 = vsyncpa [#allocation12], 1 }
 0x6f8   :  { %1894 = vsyncpa [#allocation4], 1 }
 0x6f9   :  { %1896 = vsyncpa [#allocation4 + $0x1], 1 }

</bundles_post_ra>
